<compile_context>
chip_gen: v6e
topology: v6e:2x2x1
jax: 0.10.0
libtpu: 0.0.40
codegen_flags: <defaults>
</compile_context>

<pallas_src>
import functools

import jax
import jax.numpy as jnp
from jax.experimental import pallas as pl
from jax.experimental.pallas import tpu as pltpu

EPS = 1e-5


# --------------------------------------------------------------------------- #
# Kernels
# --------------------------------------------------------------------------- #
def _layernorm_rows(h, gamma, beta):
    # h: (TM, F) f32. One-pass statistics: the two cross-lane sums are
    # independent so the XLU units can overlap them.
    f = h.shape[-1]
    s1 = jnp.sum(h, axis=-1, keepdims=True)
    s2 = jnp.sum(h * h, axis=-1, keepdims=True)
    mean = s1 * (1.0 / f)
    var = s2 * (1.0 / f) - mean * mean
    inv = jax.lax.rsqrt(var + EPS)
    return (h - mean) * inv * gamma + beta


def _resident_kernel(x_ref, w_ref, p_ref, o_ref, *, mxu_bf16):
    # x_ref: (TM, F) row tile; w_ref: (F, F) resident weights (single-buffered).
    # p_ref: (8, F) f32 packed params -- row 0: bias, 1: LN gamma, 2: LN beta.
    x = x_ref[...]
    xa = x.astype(jnp.bfloat16) if mxu_bf16 else x
    wa = w_ref[...].astype(jnp.bfloat16) if mxu_bf16 else w_ref[...]
    s = jnp.dot(xa, wa, preferred_element_type=jnp.float32)

    bias = p_ref[0:1, :]
    gamma = p_ref[1:2, :]
    beta = p_ref[2:3, :]

    # dropout (eval mode) -> identity; residual add + LayerNorm in f32.
    h = x.astype(jnp.float32) + s + bias
    o_ref[...] = _layernorm_rows(h, gamma, beta).astype(o_ref.dtype)


def _ktiled_kernel(xk_ref, w_ref, p_ref, xf_ref, o_ref, acc_ref, *, mxu_bf16):
    # xk_ref: (TM, TK) K-slab of x; w_ref: (TK, F) streamed W slab;
    # xf_ref: (TM, F) full x row tile (residual); acc_ref: (TM, F) f32 scratch.
    k = pl.program_id(1)

    @pl.when(k == 0)
    def _():
        acc_ref[...] = jnp.zeros_like(acc_ref)

    xk = xk_ref[...]
    wk = w_ref[...]
    if mxu_bf16:
        xk = xk.astype(jnp.bfloat16)
        wk = wk.astype(jnp.bfloat16)
    acc_ref[...] += jnp.dot(xk, wk, preferred_element_type=jnp.float32)

    @pl.when(k == pl.num_programs(1) - 1)
    def _():
        bias = p_ref[0:1, :]
        gamma = p_ref[1:2, :]
        beta = p_ref[2:3, :]
        h = xf_ref[...].astype(jnp.float32) + acc_ref[...] + bias
        o_ref[...] = _layernorm_rows(h, gamma, beta).astype(o_ref.dtype)


# --------------------------------------------------------------------------- #
# Wrapper
# --------------------------------------------------------------------------- #
def _vmem_budget_bytes():
    # Scoped VMEM budget sized from the device (64 MiB/TC on v7x, 128 MiB on
    # v5e/v6e), leaving headroom for compiler scratch.
    try:
        cap = int(pltpu.get_tpu_info().vmem_capacity_bytes)
    except Exception:
        cap = 64 << 20
    return min(cap * 3 // 4, 100 << 20)


def _invariant_spec(block_shape, index_map):
    # Grid-invariant operand: single-buffer it so it doesn't take 2x VMEM.
    try:
        return pl.BlockSpec(block_shape, index_map, pipeline_mode=pl.Buffered(1))
    except TypeError:  # older jax without pipeline_mode: fall back to default
        return pl.BlockSpec(block_shape, index_map)


def _align_down(v, a):
    return max(a, (int(v) // a) * a)


def _align_up(v, a):
    return pl.cdiv(int(v), a) * a


def _pick_tk(F, requested):
    if requested is not None:
        if F % requested == 0 and requested % 128 == 0 and requested < F:
            return int(requested)
        return None
    for cand in (512, 256, 128):
        if cand < F and F % cand == 0:
            return cand
    return None


def sublayer_connect(x, w, b, gamma, beta, *, tm=None, tk=None,
                     mxu_bf16=False, force_k_tiled=False):
    """y = LayerNorm(x + Dropout(Linear(x))), dropout in eval mode (identity).

    x: (B, S, F); w: (F, F); b, gamma, beta: (F,).
    """
    B, S, F = x.shape
    N = B * S
    x2 = x.reshape(N, F)

    x_bytes = jnp.dtype(x.dtype).itemsize
    w_bytes = jnp.dtype(w.dtype).itemsize
    out_bytes = x_bytes
    row_align = 16 if x_bytes < 4 else 8
    n_aligned = _align_up(N, row_align)

    budget = _vmem_budget_bytes()

    # Packed f32 params: row 0 = linear bias, 1 = LN gamma, 2 = LN beta.
    params = jnp.zeros((8, F), jnp.float32)
    params = params.at[0].set(b.astype(jnp.float32))
    params = params.at[1].set(gamma.astype(jnp.float32))
    params = params.at[2].set(beta.astype(jnp.float32))
    params_bytes = 8 * F * 4

    w_resident_bytes = F * F * w_bytes
    tk_sel = _pick_tk(F, tk)
    use_k_tiled = (force_k_tiled or w_resident_bytes > (budget * 2) // 5) and (
        tk_sel is not None)
    # TODO(synk): F not a multiple of 128 with W too big for VMEM has no K-tiled
    # fallback here (contraction padding would corrupt results); resident path
    # is used and may hit the VMEM limit for pathological F.

    # ---- row tile (tm): default, alignment, >=2 grid steps, VMEM fit ----
    if tm is None:
        tm_eff = 1024 if F <= 512 else (256 if use_k_tiled else 512)
    else:
        tm_eff = int(tm)
    tm_eff = _align_down(tm_eff, row_align)
    tm_eff = min(tm_eff, n_aligned)
    if n_aligned >= 2 * row_align:
        # Keep >= 2 row grid steps so a dual-TensorCore chip (v7x) uses both
        # cores under dimension_semantics=("parallel", ...).
        tm_eff = min(tm_eff, _align_up(pl.cdiv(N, 2), row_align))

    if not use_k_tiled:
        fixed = w_resident_bytes + params_bytes
        per_row = F * (2 * x_bytes + 2 * out_bytes)  # double-buffered in/out tiles
        while tm_eff > row_align and fixed + tm_eff * per_row > budget:
            tm_eff = _align_down(tm_eff // 2, row_align)
        if fixed + tm_eff * per_row > budget and tk_sel is not None:
            use_k_tiled = True  # resident W cannot fit even at minimal tm

    if use_k_tiled:
        fixed_k = 2 * tk_sel * F * w_bytes + params_bytes
        per_row_k = (2 * tk_sel * x_bytes            # x K-slab (double-buffered)
                     + F * (2 * x_bytes              # full x row tile
                            + 2 * out_bytes          # output tile
                            + 4))                    # f32 accumulator scratch
        while tm_eff > row_align and fixed_k + tm_eff * per_row_k > budget:
            tm_eff = _align_down(tm_eff // 2, row_align)

    compiler_params = pltpu.CompilerParams(
        dimension_semantics=("parallel", "arbitrary") if use_k_tiled
        else ("parallel",),
        vmem_limit_bytes=int(budget),
    )

    if use_k_tiled:
        kernel = functools.partial(_ktiled_kernel, mxu_bf16=mxu_bf16)
        out = pl.pallas_call(
            kernel,
            out_shape=jax.ShapeDtypeStruct((N, F), x.dtype),
            grid_spec=pltpu.PrefetchScalarGridSpec(
                num_scalar_prefetch=0,
                grid=(pl.cdiv(N, tm_eff), F // tk_sel),
                in_specs=[
                    pl.BlockSpec((tm_eff, tk_sel), lambda i, k: (i, k)),  # x K-slab
                    pl.BlockSpec((tk_sel, F), lambda i, k: (k, 0)),       # W slab
                    _invariant_spec((8, F), lambda i, k: (0, 0)),         # params
                    pl.BlockSpec((tm_eff, F), lambda i, k: (i, 0)),       # x residual
                ],
                out_specs=pl.BlockSpec((tm_eff, F), lambda i, k: (i, 0)),
                scratch_shapes=[pltpu.VMEM((tm_eff, F), jnp.float32)],
            ),
            compiler_params=compiler_params,
        )(x2, w, params, x2)
    else:
        kernel = functools.partial(_resident_kernel, mxu_bf16=mxu_bf16)
        out = pl.pallas_call(
            kernel,
            out_shape=jax.ShapeDtypeStruct((N, F), x.dtype),
            grid_spec=pltpu.PrefetchScalarGridSpec(
                num_scalar_prefetch=0,
                grid=(pl.cdiv(N, tm_eff),),
                in_specs=[
                    pl.BlockSpec((tm_eff, F), lambda i: (i, 0)),   # x row tile
                    _invariant_spec((F, F), lambda i: (0, 0)),     # resident W
                    _invariant_spec((8, F), lambda i: (0, 0)),     # packed params
                ],
                out_specs=pl.BlockSpec((tm_eff, F), lambda i: (i, 0)),
            ),
            compiler_params=compiler_params,
        )(x2, w, params)

    return out.reshape(B, S, F)


# --------------------------------------------------------------------------- #
# Reference and demo
# --------------------------------------------------------------------------- #
def reference(x, w, b, gamma, beta):
    xf = x.astype(jnp.float32)
    s = jnp.einsum("bsf,fg->bsg", xf, w.astype(jnp.float32)) + b.astype(jnp.float32)
    h = xf + s
    mean = jnp.mean(h, axis=-1, keepdims=True)
    var = jnp.mean((h - mean) ** 2, axis=-1, keepdims=True)
    y = ((h - mean) * jax.lax.rsqrt(var + EPS) * gamma.astype(jnp.float32)
         + beta.astype(jnp.float32))
    return y.astype(x.dtype)


if __name__ == "__main__":
    key = jax.random.PRNGKey(0)
    k1, k2, k3, k4 = jax.random.split(key, 4)

    # Test 1: resident-W path, f32, two row grid steps, lane-dense F.
    B, S, F = 2, 8, 128
    x = jax.random.normal(k1, (B, S, F), dtype=jnp.float32)
    w = jax.random.normal(k2, (F, F), dtype=jnp.float32) * 0.05
    b = jax.random.normal(k3, (F,), dtype=jnp.float32) * 0.01
    gamma = jnp.ones((F,), jnp.float32)   # nn.LayerNorm default weight
    beta = jnp.zeros((F,), jnp.float32)   # nn.LayerNorm default bias
    y = jax.block_until_ready(sublayer_connect(x, w, b, gamma, beta))
    y_ref = reference(x, w, b, gamma, beta)
    assert jnp.allclose(y, y_ref, atol=1e-3, rtol=1e-3), "resident path mismatch"

    # Test 2: forced K-tiled path (tk=128, 2 K steps) with a partial last row
    # block (N=34 rows) -> exercises padless masked writeback.
    B2, S2, F2 = 2, 17, 256
    x2 = jax.random.normal(k4, (B2, S2, F2), dtype=jnp.float32)
    w2 = jax.random.normal(k2, (F2, F2), dtype=jnp.float32) * 0.03
    b2 = jax.random.normal(k3, (F2,), dtype=jnp.float32) * 0.01
    g2 = jnp.full((F2,), 1.1, jnp.float32)
    be2 = jnp.full((F2,), -0.05, jnp.float32)
    y2 = jax.block_until_ready(
        sublayer_connect(x2, w2, b2, g2, be2, force_k_tiled=True))
    y2_ref = reference(x2, w2, b2, g2, be2)
    assert jnp.allclose(y2, y2_ref, atol=1e-3, rtol=1e-3), "k-tiled path mismatch"

    # Test 3: bf16 activations/weights through the native-dtype MXU path.
    xb = x.astype(jnp.bfloat16)
    wb = w.astype(jnp.bfloat16)
    y3 = jax.block_until_ready(sublayer_connect(xb, wb, b, gamma, beta))
    y3_ref = reference(xb, wb, b, gamma, beta)
    assert jnp.allclose(y3.astype(jnp.float32), y3_ref.astype(jnp.float32),
                        atol=2e-2, rtol=2e-2), "bf16 path mismatch"

    print("KERNEL_OK")
</pallas_src>

<mosaic_0001>
module attributes {stable_mosaic.version = 11 : i64} {
  func.func @_resident_kernel(%arg0: i32, %arg1: memref<8x128xf32, #tpu.memory_space<vmem>>, %arg2: memref<128x128xf32, #tpu.memory_space<vmem>>, %arg3: memref<8x128xf32, #tpu.memory_space<vmem>>, %arg4: memref<8x128xf32, #tpu.memory_space<vmem>>) attributes {dimension_semantics = [#tpu.dimension_semantics<parallel>], iteration_bounds = array<i64: 2>, scalar_prefetch = 0 : i64, scratch_operands = 0 : i64, tpu.core_type = #tpu.core_type<tc>, window_params = [{transform_indices = @transform_0, window_bounds = array<i64: 8, 128>}, {pipeline_mode = #tpu.pipeline_mode<synchronous>, transform_indices = @transform_1, window_bounds = array<i64: 128, 128>}, {pipeline_mode = #tpu.pipeline_mode<synchronous>, transform_indices = @transform_2, window_bounds = array<i64: 8, 128>}, {transform_indices = @transform_3, window_bounds = array<i64: 8, 128>}]} {
    %c0 = arith.constant 0 : index
    %c0_0 = arith.constant 0 : index
    %0 = vector.load %arg1[%c0, %c0_0] : memref<8x128xf32, #tpu.memory_space<vmem>>, vector<8x128xf32>
    %c0_1 = arith.constant 0 : index
    %c0_2 = arith.constant 0 : index
    %1 = vector.load %arg2[%c0_1, %c0_2] : memref<128x128xf32, #tpu.memory_space<vmem>>, vector<128x128xf32>
    %cst = arith.constant dense<0.000000e+00> : vector<8x128xf32>
    %2 = tpu.matmul %0, %1, %cst {dimension_numbers = #tpu.dot_dimension_numbers<[1], [0], [0], [1], [0, 0, 1, 1], [], []>} : vector<8x128xf32>, vector<128x128xf32>, vector<8x128xf32> -> vector<8x128xf32>
    %c0_3 = arith.constant 0 : index
    %c0_4 = arith.constant 0 : index
    %3 = vector.load %arg3[%c0_3, %c0_4] : memref<8x128xf32, #tpu.memory_space<vmem>>, vector<1x128xf32>
    %c1 = arith.constant 1 : index
    %c0_5 = arith.constant 0 : index
    %4 = vector.load %arg3[%c1, %c0_5] : memref<8x128xf32, #tpu.memory_space<vmem>>, vector<1x128xf32>
    %c2 = arith.constant 2 : index
    %c0_6 = arith.constant 0 : index
    %5 = vector.load %arg3[%c2, %c0_6] : memref<8x128xf32, #tpu.memory_space<vmem>>, vector<1x128xf32>
    %6 = arith.addf %0, %2 : vector<8x128xf32>
    %7 = vector.broadcast %3 : vector<1x128xf32> to vector<8x128xf32>
    %8 = arith.addf %6, %7 : vector<8x128xf32>
    %cst_7 = arith.constant dense<0.000000e+00> : vector<8xf32>
    %9 = vector.multi_reduction <add>, %8, %cst_7 [1] : vector<8x128xf32> to vector<8xf32>
    %10 = vector.shape_cast %9 : vector<8xf32> to vector<8x1xf32>
    %11 = arith.mulf %8, %8 : vector<8x128xf32>
    %cst_8 = arith.constant dense<0.000000e+00> : vector<8xf32>
    %12 = vector.multi_reduction <add>, %11, %cst_8 [1] : vector<8x128xf32> to vector<8xf32>
    %13 = vector.shape_cast %12 : vector<8xf32> to vector<8x1xf32>
    %cst_9 = arith.constant 7.812500e-03 : f32
    %14 = vector.broadcast %cst_9 : f32 to vector<8x1xf32>
    %15 = arith.mulf %10, %14 : vector<8x1xf32>
    %cst_10 = arith.constant 7.812500e-03 : f32
    %16 = vector.broadcast %cst_10 : f32 to vector<8x1xf32>
    %17 = arith.mulf %13, %16 : vector<8x1xf32>
    %18 = arith.mulf %15, %15 : vector<8x1xf32>
    %19 = arith.subf %17, %18 : vector<8x1xf32>
    %cst_11 = arith.constant 9.99999974E-6 : f32
    %20 = vector.broadcast %cst_11 : f32 to vector<8x1xf32>
    %21 = arith.addf %19, %20 : vector<8x1xf32>
    %22 = math.rsqrt %21 : vector<8x1xf32>
    %23 = vector.broadcast %15 : vector<8x1xf32> to vector<8x128xf32>
    %24 = arith.subf %8, %23 : vector<8x128xf32>
    %25 = vector.broadcast %22 : vector<8x1xf32> to vector<8x128xf32>
    %26 = arith.mulf %24, %25 : vector<8x128xf32>
    %27 = vector.broadcast %4 : vector<1x128xf32> to vector<8x128xf32>
    %28 = arith.mulf %26, %27 : vector<8x128xf32>
    %29 = vector.broadcast %5 : vector<1x128xf32> to vector<8x128xf32>
    %30 = arith.addf %28, %29 : vector<8x128xf32>
    %c0_12 = arith.constant 0 : index
    %c0_13 = arith.constant 0 : index
    %31 = vector.load %arg4[%c0_12, %c0_13] : memref<8x128xf32, #tpu.memory_space<vmem>>, vector<8x128xf32>
    tpu.vector_store %arg4[%c0_12, %c0_13], %30 {strides = array<i32>} : memref<8x128xf32, #tpu.memory_space<vmem>>, vector<8x128xf32>,
    return
  }
  func.func @transform_0(%arg0: i32) -> (i32, i32) {
    %c0_i32 = arith.constant 0 : i32
    %c0_i32_0 = arith.constant 0 : i32
    return %arg0, %c0_i32 : i32, i32
  }
  func.func @transform_1(%arg0: i32) -> (i32, i32) {
    %c0_i32 = arith.constant 0 : i32
    %c0_i32_0 = arith.constant 0 : i32
    %c0_i32_1 = arith.constant 0 : i32
    return %c0_i32, %c0_i32_0 : i32, i32
  }
  func.func @transform_2(%arg0: i32) -> (i32, i32) {
    %c0_i32 = arith.constant 0 : i32
    %c0_i32_0 = arith.constant 0 : i32
    %c0_i32_1 = arith.constant 0 : i32
    return %c0_i32, %c0_i32_0 : i32, i32
  }
  func.func @transform_3(%arg0: i32) -> (i32, i32) {
    %c0_i32 = arith.constant 0 : i32
    %c0_i32_0 = arith.constant 0 : i32
    return %arg0, %c0_i32 : i32, i32
  }
}

</mosaic_0001>

<bundles_post_ra>
// kernel: tpu_custom_call.1
= control target key start
LH: loop header
LB: loop body
LE: loop exit
PB: predicated region body
PF: predicated region fallthrough
CT: control target
= control target key end

     0   :  { %8 = vsyncpa [#allocation3], 0  ;;  %s930_s0 = inlined_call_operand.hbm [shape: f32[16,128], index: 0, kind: input, shape index: {}]   ;;  %s931_s1 = inlined_call_operand.hbm [shape: f32[128,128], index: 1, kind: input, shape index: {}]   ;;  %s932_s2 = inlined_call_operand.hbm [shape: f32[8,128], index: 2, kind: input, shape index: {}]   ;;  %s933_s3 = inlined_call_operand.hbm [shape: f32[16,128], index: 3, kind: output, shape index: {}]  }
   0x1   :  { %10 = vsyncpa [#allocation3 + $0x1], 0 }
   0x2   :  { %11 = vsyncpa [#allocation6], 0 }
   0x3   :  { %12 = vsyncpa [#allocation4], 0 }
   0x4   :  { %14 = vsyncpa [#allocation4 + $0x1], 0  ;;  %s758_s12 = smov 0   ;;  %s760_s13 = smov 0  }
   0x5   :  { %s762_s14 = smov 0   ;;  %s764_s15 = smov 0  }
   0x6 LB: > { %s779_s16 = sadd.s32 4294967295, %s728_s15   ;;  %s436_s17 = sadd.s32 4294967294, %s728_s15   ;;  %s728_s15 = sphi %s764_s15, %s955_s15   ;;  %s724_s14 = sphi %s762_s14, %s954_s14   ;;  %s720_s13 = sphi %s760_s13, %s953_s13   ;;  %s716_s12 = sphi %s758_s12, %s952_s12  }
   0x7   : > { %p40_p0 = scmp.ne.s32.totalorder %s720_s13, %s716_s12  ;;  %p934_p1 = scmp.eq.s32.totalorder %s779_s16, 0 }
   0x8   : > { %p112_p3 = scmp.eq.s32.totalorder %s436_s17, 1  ;;  %p437_p5 = scmp.ge.s32.totalorder %s728_s15, 1 }
   0x9   : > { %p788_p4 = por %p934_p1, %p40_p0  ;;  %p119_p7 = scmp.lt.s32.totalorder %s728_s15, 3 }
   0xa   : > { %p793_p6 = por %p112_p3, %p40_p0  ;;  %s730_s21 = smov [#allocation5]  }
   0xb   : > { %s938_s18 = scalar_select %p788_p4, 1, 0 }
   0xc   : > { %s939_s19 = scalar_select %p793_p6, 1, 0 }
   0xd   : > { %p798_p8 = pnand %p437_p5, %p119_p7  ;;  %s131_s22 = sshll.u32 %s730_s21, 4  ;;  %s132_s22 = int_to_ptr.vmem [resolvable:$true] %s131_s22 }
   0xe   : > { %s731_s24 = smov [#allocation7]   ;;  %s591_s26 = scalar_lea.vmem %s132_s22, 2048 }
   0xf   : > { %s940_s20 = scalar_select %p798_p8, 1, 0 }
  0x10   : > { %p519_p9 = pneg %p798_p8  ;;  %s145_s25 = sshll.u32 %s731_s24, 4  ;;  %s146_s25 = int_to_ptr.vmem [resolvable:$true] %s145_s25 }
  0x11   : > { %p592_p13 = scmp.ne.s32.totalorder %s132_s22, %s591_s26  ;;  %p599_p5 = scmp.lt.s32.totalorder %s132_s22, %s132_s22 }
  0x12   : > { %p807_p11 = pnand %p519_p9, %p934_p1  ;;  %p600_p7 = scmp.lt.s32.totalorder %s591_s26, %s591_s26 }
  0x14   : > { %p582_p12 = pneg %p807_p11  ;;  %p601_p10 = por %p600_p7, %p599_p5 }
  0x16   : > { %p594_p0 = pnand %p592_p13, %p582_p12 }
  0x18   : > { %p595_p3 = pneg %p594_p0 }
  0x1a   : > { %p602_p9 = pnand %p601_p10, %p595_p3 }
  0x1c   : > { %605 = shalt.err (!%p602_p9)
}
  0x1d   : > { %s732_s27 = smov 128   ;;  %s733_s28 = smov 8  }
  0x1e   : > { %522 = dma.hbm_to_vmem [thread:$0]  (!%p807_p11), %s931_s1, 2048, %s132_s22, [#allocation6], %s732_s27, %s732_s27, %s733_s28  }
  0x1f   : > { %s617_s4 = scalar_lea.vmem %s146_s25, 128  ;;  %p625_p2 = scmp.lt.s32.totalorder %s146_s25, %s146_s25 }
  0x20   : > { %p618_p1 = scmp.ne.s32.totalorder %s146_s25, %s617_s4  ;;  %p626_p6 = scmp.lt.s32.totalorder %s617_s4, %s617_s4 }
  0x22   : > { %p620_p13 = pnand %p618_p1, %p582_p12  ;;  %p627_p5 = por %p626_p6, %p625_p2 }
  0x24   : > { %p621_p0 = pneg %p620_p13 }
  0x26   : > { %p628_p10 = pnand %p627_p5, %p621_p0 }
  0x28   : > { %631 = shalt.err (!%p628_p10)
}
  0x29   : > { %525 = dma.hbm_to_vmem [thread:$0]  (!%p807_p11), %s932_s2, 128, %s146_s25, [#allocation6]  }
  0x2a   : > { %s830_s7 = sadd.s32 1, %s728_s15   ;;  %s27_s8 = sadd.s32 1, %s724_s14 }
  0x2b   : > { %s24_s9 = ssub.s32 %s728_s15, %s830_s7  ;;  %p34_p1 = scmp.ne.s32.totalorder %s724_s14, %s720_s13 }
  0x2c   : > { %p25_p2 = scmp.eq.s32.totalorder %s24_s9, 0  ;;  %p35_p6 = scmp.eq.s32.totalorder %s728_s15, 0 }
  0x2d   : > { %p942_p12 = scmp.eq.s32.totalorder %s779_s16, 1  ;;  %p536_p7 = scmp.lt.s32.totalorder %s728_s15, 2 }
  0x2e   : > { %s846_s11 = scalar_select %p25_p2, %s724_s14, %s27_s8  }
  0x2f   : > { %p840_p3 = por %p942_p12, %p34_p1  ;;  %p36_p9 = por %p35_p6, %p34_p1 }
  0x30   : > { %s156_s17 = sand.u32 1, %s724_s14   ;;  %s442_s22 = sshll.u32 %s728_s15, 7 }
  0x31   : > { %s943_s10 = scalar_select %p840_p3, 1, 0 }
  0x32   : > { %s441_s21 = sshll.u32 %s156_s17, 3  ;;  %s853_s25 = scalar_lea.hbm %s930_s0, %s442_s22 }
  0x33   : > { %s160_s26 = scalar_lea.vmem [#allocation2], %s441_s21  ;;  %p855_p11 = pnand %p536_p7, %p36_p9 }
  0x34   : > { %s167_s27 = sshll.u32 %s160_s26, 4  ;;  %s157_s29 = scalar_lea.sflag [#allocation3], %s156_s17  ;;  %s168_s27 = int_to_ptr.vmem [resolvable:$true] %s167_s27 }
  0x35   : > { %s632_s30 = scalar_lea.hbm %s853_s25, 128  ;;  %p634_p0 = pneg %p855_p11 }
  0x36   : > { %p633_p13 = scmp.ne.s32.totalorder %s853_s25, %s632_s30  ;;  %s637_s6 = scalar_lea.hbm %s930_s0, 256 }
  0x37   : > { %p638_p1 = scmp.lt.s32.totalorder %s853_s25, %s930_s0  ;;  %p639_p2 = scmp.lt.s32.totalorder %s637_s6, %s632_s30 }
  0x38   : > { %p635_p5 = pnand %p634_p0, %p633_p13 }
  0x39   : > { %p640_p6 = por %p639_p2, %p638_p1 }
  0x3a   : > { %p636_p10 = pneg %p635_p5 }
  0x3c   : > { %p641_p12 = pnand %p640_p6, %p636_p10 }
  0x3e   : > { %644 = shalt.err (!%p641_p12)
}
  0x3f   : > { %s645_s21 = scalar_lea.vmem %s168_s27, 128  ;;  %s734_s17 = smov [#allocation2]  }
  0x40   : > { %p646_p7 = scmp.ne.s32.totalorder %s168_s27, %s645_s21  ;;  %s650_s22 = sshll.u32 %s734_s17, 4  ;;  %s651_s22 = int_to_ptr.vmem [resolvable:$false] %s650_s22 }
  0x41   : > { %s652_s23 = scalar_lea.vmem %s651_s22, 256  ;;  %p653_p13 = scmp.lt.s32.totalorder %s168_s27, %s651_s22 }
  0x42   : > { %p648_p9 = pnand %p646_p7, %p634_p0  ;;  %p654_p5 = scmp.lt.s32.totalorder %s652_s23, %s645_s21 }
  0x44   : > { %p649_p3 = pneg %p648_p9  ;;  %p655_p4 = por %p654_p5, %p653_p13 }
  0x46   : > { %p656_p8 = pnand %p655_p4, %p649_p3 }
  0x48   : > { %659 = shalt.err (!%p656_p8)
}
  0x49   : > { %529 = dma.hbm_to_vmem [thread:$0]  (!%p855_p11), %s853_s25, 128, %s168_s27, %s157_s29  }
  0x4a   : > { %p945_p10 = scmp.ne.s32.totalorder %s940_s20, 0 }
  0x4b   : > { %s876_s24 = sand.u32 (!%p945_p10), 1, %s720_s13   ;;  %p946_p4 = scmp.ne.s32.totalorder (!%p945_p10), %s938_s18, 0 }
  0x4c   : > { %176 = sbr.rel (%p945_p10) target bundleno = 496 (0x1f0), region = 32  ;;  %s444_s26 = sshll.u32 (!%p945_p10), %s876_s24, 3 }
  0x4d   : > { %s179_s30 = scalar_lea.sflag (!%p945_p10), [#allocation3], %s876_s24  ;;  %s882_s4 = scalar_lea.vmem (!%p945_p10), [#allocation2], %s444_s26 }
  0x51   : > { %703 = dma.done.wait (%p946_p4), %s179_s30, 128  }
  0x52   : > { %705 = vsyncadd (%p946_p4), %s179_s30, 4294967168  ;;  %p947_p8 = scmp.eq.s32.totalorder %s779_s16, 0 }
  0x54   : > { %707 = dma.done.wait (%p947_p8), [#allocation6], 2176   ;;  %p948_p3 = pmov %p947_p8 }
  0x55   : > { %v735_v0 = vmov 0.0   ;;  %vm736_vm0 = vmmov 0   ;;  %v229_v1 = vld [vmem:[#allocation5 + $0x78] sm:$0xff]  ;;  %v228_v2 = vld [vmem:[#allocation5 + $0x70] sm:$0xff]  ;;  %v227_v3 = vld [vmem:[#allocation5 + $0x68] sm:$0xff]  ;;  %s452_s18 = sshll.u32 %s779_s16, 7 }
  0x56   : > { %709 = vsyncadd (%p948_p3), [#allocation6], 4294965120  ;;  %472 = vmatprep.subr.mxu0 %v735_v0  ;;  %504 = vmatprep.mubr.msk.f32.mxu0 %vm736_vm0, %v735_v0  ;;  %v226_v4 = vld [vmem:[#allocation5 + $0x60] sm:$0xff]  ;;  %v225_v5 = vld [vmem:[#allocation5 + $0x58] sm:$0xff]  ;;  %s212_s20 = scalar_lea.vmem [#allocation8], %s444_s26  ;;  %s345_s29 = scalar_lea.hbm %s933_s3, %s452_s18 }
  0x57   : > { %473 = vmatpush3.msra.mxu0 %v229_v1  ;;  %v224_v6 = vld [vmem:[#allocation5 + $0x50] sm:$0xff]  ;;  %v223_v7 = vld [vmem:[#allocation5 + $0x48] sm:$0xff]  ;;  %v222_v8 = vld [vmem:[#allocation5 + $0x40] sm:$0xff]  ;;  %s347_s25 = sshll.u32 %s212_s20, 4  ;;  %s334_s5 = scalar_lea.sflag [#allocation4], %s876_s24  ;;  %s348_s25 = int_to_ptr.vmem [resolvable:$true] %s347_s25 }
  0x58   : > { %474 = vmatprep.subr.mxu0 %v735_v0  ;;  %v221_v9 = vld [vmem:[#allocation5 + $0x38] sm:$0xff]  ;;  %v220_v10 = vld [vmem:[#allocation5 + $0x30] sm:$0xff]  ;;  %v219_v11 = vld [vmem:[#allocation5 + $0x28] sm:$0xff]  ;;  %s660_s6 = scalar_lea.vmem %s348_s25, 128  ;;  %p949_p0 = scmp.ne.s32.totalorder %s943_s10, 0 }
  0x59   : > { %475 = vmatpush3.msra.mxu0 %v228_v2  ;;  %v218_v12 = vld [vmem:[#allocation5 + $0x20] sm:$0xff]  ;;  %v217_v13 = vld [vmem:[#allocation5 + $0x18] sm:$0xff]  ;;  %v216_v14 = vld [vmem:[#allocation5 + $0x10] sm:$0xff]  ;;  %p661_p11 = scmp.ne.s32.totalorder %s348_s25, %s660_s6  ;;  %s737_s8 = smov [#allocation8]  }
  0x5a   : > { %476 = vmatprep.subr.mxu0 %v735_v0  ;;  %v215_v15 = vld [vmem:[#allocation5 + $0x8] sm:$0xff]  ;;  %v214_v16 = vld [vmem:[#allocation5] sm:$0xff]  ;;  %v213_v17 = vld [vmem:[%s882_s4] sm:$0xff]  ;;  %s664_s9 = sshll.u32 %s737_s8, 4  ;;  %s665_s9 = int_to_ptr.vmem [resolvable:$false] %s664_s9 }
  0x5b   : > { %477 = vmatpush3.msra.mxu0 %v227_v3  ;;  %v448_v19 = vld [vmem:[#allocation7] ss:$0 sm:$0xff]  ;;  %v449_v33 = vld [vmem:[#allocation7 + $0x1] ss:$0 sm:$0xff]  ;;  %v450_v35 = vld [vmem:[#allocation7 + $0x2] ss:$0 sm:$0xff]  ;;  %p662_p1 = pnand %p661_p11, %p949_p0  ;;  %p667_p6 = scmp.lt.s32.totalorder %s348_s25, %s665_s9 }
  0x5c   : > { %478 = vmatprep.subr.mxu0 %v735_v0  ;;  %s666_s16 = scalar_lea.vmem %s665_s9, 256 }
  0x5d   : > { %479 = vmatpush3.msra.mxu0 %v226_v4  ;;  %p663_p2 = pneg %p662_p1  ;;  %p668_p12 = scmp.lt.s32.totalorder %s666_s16, %s660_s6 }
  0x5e   : > { %480 = vmatprep.subr.mxu0 %v735_v0 }
  0x5f   : > { %481 = vmatpush3.msra.mxu0 %v225_v5  ;;  %p669_p7 = por %p668_p12, %p667_p6 }
  0x60   : > { %482 = vmatprep.subr.mxu0 %v735_v0 }
  0x61   : > { %483 = vmatpush3.msra.mxu0 %v224_v6  ;;  %p670_p9 = pnand %p669_p7, %p663_p2 }
  0x62   : > { %484 = vmatprep.subr.mxu0 %v735_v0 }
  0x63   : > { %485 = vmatpush3.msra.mxu0 %v223_v7 }
  0x64   : > { %486 = vmatprep.subr.mxu0 %v735_v0 }
  0x65   : > { %487 = vmatpush3.msra.mxu0 %v222_v8 }
  0x66   : > { %488 = vmatprep.subr.mxu0 %v735_v0 }
  0x67   : > { %489 = vmatpush3.msra.mxu0 %v221_v9 }
  0x68   : > { %490 = vmatprep.subr.mxu0 %v735_v0 }
  0x69   : > { %491 = vmatpush3.msra.mxu0 %v220_v10 }
  0x6a   : > { %492 = vmatprep.subr.mxu0 %v735_v0 }
  0x6b   : > { %493 = vmatpush3.msra.mxu0 %v219_v11 }
  0x6c   : > { %494 = vmatprep.subr.mxu0 %v735_v0 }
  0x6d   : > { %495 = vmatpush3.msra.mxu0 %v218_v12 }
  0x6e   : > { %496 = vmatprep.subr.mxu0 %v735_v0 }
  0x6f   : > { %497 = vmatpush3.msra.mxu0 %v217_v13 }
  0x70   : > { %498 = vmatprep.subr.mxu0 %v735_v0 }
  0x71   : > { %499 = vmatpush3.msra.mxu0 %v216_v14 }
  0x72   : > { %500 = vmatprep.subr.mxu0 %v735_v0 }
  0x73   : > { %501 = vmatpush3.msra.mxu0 %v215_v15 }
  0x74   : > { %502 = vmatprep.subr.mxu0 %v735_v0 }
  0x75   : > { %503 = vmatpush3.msra.mxu0 %v214_v16 }
  0x76   : > { %505 = vmatmul.mubr.f32.vlgmr.msra.gmra.mxu0 %v213_v17 }
 0x136   : > { %v296_v18 = vpop.f32.mrf.mxu0 }
 0x137   : > { %v303_v20 = vadd.f32 %v296_v18, %v213_v17 }
 0x138   : > { %v506_v21 = vpop.f32.mrf.mxu0 }
 0x139   : > { %v308_v22 = vadd.f32 %v448_v19, %v303_v20 }
 0x13b   : > { %309 = vadd.xlane.f32.xlu0 %v308_v22  ;;  %v311_v23 = vmul.f32 %v308_v22, %v308_v22 }
 0x13f   : > { %312 = vadd.xlane.f32.xlu0 %v311_v23 }
 0x1c4   : > { %v310_v24 = vpop.xlane.xlu0 %309 }
 0x1c5   : > { %v314_v25 = vmul.f32 0.0078125, %v310_v24 }
 0x1c7   : > { %v316_v27 = vmul.f32 %v314_v25, %v314_v25  ;;  %v320_v31 = vsub.f32 %v308_v22, %v314_v25 }
 0x1c8   : > { %v313_v26 = vpop.xlane.xlu0 %312 }
 0x1c9   : > { %v315_v28 = vmul.f32 0.0078125, %v313_v26 }
 0x1cb   : > { %v317_v29 = vsub.f32 %v315_v28, %v316_v27 }
 0x1cd   : > { %v318_v30 = vadd.f32 1e-05, %v317_v29 }
 0x1cf   : > { %578 = vrsqrt.f32 %v318_v30 }
 0x1dc   : > { %v579_v32 = vpop.eup %578 }
 0x1dd   : > { %v321_v34 = vmul.f32 %v579_v32, %v320_v31 }
 0x1df   : > { %v326_v36 = vmul.f32 %v449_v33, %v321_v34 }
 0x1e1   : > { %v331_v37 = vadd.f32 %v450_v35, %v326_v36 }
 0x1e3   : > { %332 = vst [vmem:[%s212_s20] sm:$0xff] %v331_v37 }
 0x1e4   : > { %673 = shalt.err (!%p670_p9)
}
 0x1e5   : > { %s674_s21 = scalar_lea.hbm %s345_s29, 128  ;;  %s678_s23 = scalar_lea.hbm %s933_s3, 256 }
 0x1e6   : > { %p675_p13 = scmp.ne.s32.totalorder %s345_s29, %s674_s21  ;;  %p679_p4 = scmp.lt.s32.totalorder %s345_s29, %s933_s3 }
 0x1e7   : > { %p680_p8 = scmp.lt.s32.totalorder %s678_s23, %s674_s21 }
 0x1e8   : > { %p676_p5 = pnand %p675_p13, %p949_p0 }
 0x1e9   : > { %p681_p3 = por %p680_p8, %p679_p4 }
 0x1ea   : > { %p677_p10 = pneg %p676_p5 }
 0x1ec   : > { %p682_p11 = pnand %p681_p3, %p677_p10 }
 0x1ee   : > { %685 = shalt.err (!%p682_p11)
}
 0x1ef   : > { %517 = dma.vmem_to_hbm [thread:$0]  (%p949_p0), %s348_s25, 128, %s345_s29, %s334_s5  }
 0x1f0 PF: > { %s359_s30 = sand.u32 1, %s716_s12   ;;  %p950_p1 = scmp.ne.s32.totalorder %s939_s19, 0 }
 0x1f1   : > { %p951_p2 = scmp.ge.s32.totalorder %s728_s15, 2  ;;  %s360_s4 = scalar_lea.sflag [#allocation4], %s359_s30 }
 0x1f3   : > { %p531_p6 = pnand %p951_p2, %p950_p1 }
 0x1f5   : > { %p532_p12 = pneg %p531_p6 }
 0x1f7   : > { %711 = dma.done.wait (%p532_p12), %s360_s4, 128  }
 0x1f8   : > { %713 = vsyncadd (%p532_p12), %s360_s4, 4294967168  ;;  %p17_p7 = scmp.ge.s32.totalorder %s830_s7, 4   ;;  %s952_s12 = smov %s720_s13 }
 0x1f9   : > { %s953_s13 = smov %s724_s14  ;;  %s954_s14 = smov %s846_s11 }
 0x1fa   : > { %s955_s15 = smov %s830_s7  ;;  %19 = sbr.rel (!%p17_p7) target bundleno = 6 (0x6), region = 85 }
 0x1ff   :  { %365 = vsyncpa [#allocation3], 1 }
 0x200   :  { %367 = vsyncpa [#allocation3 + $0x1], 1 }
 0x201   :  { %368 = vsyncpa [#allocation6], 1 }
 0x202   :  { %369 = vsyncpa [#allocation4], 1 }
 0x203   :  { %371 = vsyncpa [#allocation4 + $0x1], 1 }

</bundles_post_ra>
